<compile_context>
chip_gen: v5e
topology: v5e:2x2
jax: 0.10.0
libtpu: 0.0.40
codegen_flags: <defaults>
</compile_context>

<pallas_src>
import functools

import jax
import jax.numpy as jnp
from jax import lax
from jax.experimental import pallas as pl
from jax.experimental.pallas import tpu as pltpu

INF = -10000.0

# Rows of the flattened (B*S, H) matrix per pass-1 grid step.  1024 rows amortizes the
# ~0.35us per-grid-step pipeline overhead to ~10% at H~1024 (measured tiling curve
# 256->63%, 512->85%, 1024->86% of roofline).  VMEM at tm=1024, H=1024 is ~20 MiB
# (f32 x tile x2 bufs + bf16 W1 x2 + f32 h scratch), so raise the scoped-VMEM limit to
# 32 MiB (v6e/v7x default; v5e's default is only 16 MiB and would OOM otherwise).
_ROW_TILE = 1024
_VMEM_LIMIT_BYTES = 32 * 1024 * 1024


def _head_kernel(x_ref, w1_ref, b1_ref, w2_ref, b2_ref, out_ref):
    """Fused start/end head on a row tile: out = relu(x@W1+b1) @ W2 + b2  -> (tm, 2)."""
    x = x_ref[...].astype(jnp.bfloat16)                  # f32 HBM tile -> bf16 in VMEM
    h = jnp.dot(x, w1_ref[...], preferred_element_type=jnp.float32) + b1_ref[...]
    h = jnp.maximum(h, 0.0)                              # (tm, H) f32
    out_ref[...] = (jnp.dot(h.astype(jnp.bfloat16), w2_ref[...],
                            preferred_element_type=jnp.float32)
                    + b2_ref[...])                       # (tm, 2) f32, no transpose


def _tail_kernel(xcls_ref, w3_ref, b3_ref, w4_ref, b4_ref,
                 se_ref, mask_ref, lab_ref, yn_ref, loss_ref, *, seq_len, batch):
    """Single step: batched CLS head + masking + cross-entropy loss (lane-dense)."""
    # ---- yes/no/unk head on all CLS tokens at once (M = B matmul) ----
    xcls = xcls_ref[...].astype(jnp.bfloat16)                     # cast in VMEM
    h2 = jnp.maximum(
        jnp.dot(xcls, w3_ref[...], preferred_element_type=jnp.float32)
        + b3_ref[...], 0.0)                                       # (B, H) f32
    yn = jnp.dot(h2, w4_ref[...], preferred_element_type=jnp.float32) + b4_ref[...]
    yn_ref[...] = yn                                              # (B, 3)

    # ---- masking + cross-entropy over concat([masked_seq_logits, yes, no, unk]) ----
    se = se_ref[...]                                              # (2, B, S) f32, S lanes
    mask = mask_ref[...][None]                                    # (1, B, S)
    masked = se * mask + (1.0 - mask) * INF                       # (2, B, S)
    yn3 = yn[None]                                                # (1, B, 3)
    labels = lab_ref[...][:, :, None]                             # (2, B, 1) int32

    # streamed logsumexp over the S + 3 concatenated logits (no materialized concat)
    m = jnp.maximum(jnp.max(masked, axis=-1, keepdims=True),
                    jnp.max(yn3, axis=-1, keepdims=True))         # (2, B, 1)
    sexp = (jnp.sum(jnp.exp(masked - m), axis=-1, keepdims=True) +
            jnp.sum(jnp.exp(yn3 - m), axis=-1, keepdims=True))    # (2, B, 1)
    lse = m + jnp.log(sexp)                                       # (2, B, 1)

    idx_seq = lax.broadcasted_iota(jnp.int32, masked.shape, 2)            # 0..S-1
    idx_yn = lax.broadcasted_iota(jnp.int32, (2, batch, 3), 2) + seq_len  # S..S+2
    picked = (jnp.sum(jnp.where(idx_seq == labels, masked, 0.0), axis=-1, keepdims=True) +
              jnp.sum(jnp.where(idx_yn == labels, yn3, 0.0), axis=-1, keepdims=True))

    per = lse - picked                                            # (2, B, 1)
    tot = jnp.sum(per, axis=0, keepdims=True)                     # (1, B, 1)
    tot = jnp.sum(tot, axis=1, keepdims=True)                     # (1, 1, 1)
    loss_ref[...] = tot[0] * (0.5 / batch)                        # (mean_s+mean_e)/2


def roberta_coqa_pallas(sequence_output, input_mask, all_start_label, all_end_label,
                        w1, b1, w2, b2, w3, b3, w4, b4):
    """Returns (loss (1,1), start_logits (B,S), end_logits (B,S), yn_logits (B,3))."""
    B, S, H = sequence_output.shape
    BS = B * S

    # ------ pass 1: fused start/end projection over row tiles (reads f32 directly) ------
    x2d = sequence_output.reshape(BS, H)      # free reshape; no cast / pad HBM pass
    if BS <= _ROW_TILE:
        tm = BS                               # single full block (exempt from (8,128) rule)
    else:
        tm = _ROW_TILE                        # grid >= 2 -> shards over v7x's 2 TCs
    grid = (pl.cdiv(BS, tm),)                 # ragged last block: OOB rows never written

    w1b = w1.astype(jnp.bfloat16)             # weights in bf16 for the MXU (one-time cast)
    w2b = w2.astype(jnp.bfloat16)             # (H, 2)

    cost = pl.CostEstimate(
        flops=2 * BS * H * (H + 2),
        transcendentals=0,
        bytes_accessed=4 * BS * H + 2 * H * H + 2 * H * 2 + 4 * H + 8 + 8 * BS)

    # TODO(synk): on v7x an fp8 path for x@W1 would ~2x the MXU-bound pass; kept bf16 here
    #             (portable to v5e/v6e and accuracy-safe).
    se_flat = pl.pallas_call(
        _head_kernel,
        out_shape=jax.ShapeDtypeStruct((BS, 2), jnp.float32),
        grid=grid,
        in_specs=[
            pl.BlockSpec((tm, H), lambda i: (i, 0)),   # x row tile (f32, cast in VMEM)
            pl.BlockSpec((H, H), lambda i: (0, 0)),    # w1 (grid-invariant)
            pl.BlockSpec((1, H), lambda i: (0, 0)),    # b1
            pl.BlockSpec((H, 2), lambda i: (0, 0)),    # w2 (fused start/end)
            pl.BlockSpec((1, 2), lambda i: (0, 0)),    # b2
        ],
        out_specs=pl.BlockSpec((tm, 2), lambda i: (i, 0)),
        compiler_params=pltpu.CompilerParams(
            dimension_semantics=("parallel",),
            vmem_limit_bytes=_VMEM_LIMIT_BYTES),
        cost_estimate=cost,
    )(x2d, w1b, b1, w2b, b2)

    # tiny (BS,2) -> (2,B,S) relayout in the wrapper; S lane-dense for the CE in pass 2
    seq_logits = jnp.transpose(se_flat.reshape(B, S, 2), (2, 0, 1))   # (2, B, S) f32

    # ------------- pass 2: CLS head + masking + CE loss (single step) -------------
    x_cls = sequence_output[:, 0, :]                              # (B, H) f32, cast in kernel
    w3b = w3.astype(jnp.bfloat16)
    mask_f = input_mask.astype(jnp.float32).reshape(B, S)
    labels = jnp.stack([all_start_label, all_end_label]).astype(jnp.int32)  # (2, B)

    kern = functools.partial(_tail_kernel, seq_len=S, batch=B)
    yn, loss = pl.pallas_call(
        kern,
        out_shape=(jax.ShapeDtypeStruct((B, 3), jnp.float32),
                   jax.ShapeDtypeStruct((1, 1), jnp.float32)),
        grid=(1,),
        in_specs=[
            pl.BlockSpec((B, H), lambda i: (0, 0)),        # pooled CLS rows (f32)
            pl.BlockSpec((H, H), lambda i: (0, 0)),        # w3 (bf16)
            pl.BlockSpec((1, H), lambda i: (0, 0)),        # b3
            pl.BlockSpec((H, 3), lambda i: (0, 0)),        # w4
            pl.BlockSpec((1, 3), lambda i: (0, 0)),        # b4
            pl.BlockSpec((2, B, S), lambda i: (0, 0, 0)),  # start/end logits (lane-dense)
            pl.BlockSpec((B, S), lambda i: (0, 0)),        # input mask
            pl.BlockSpec((2, B), lambda i: (0, 0)),        # labels
        ],
        out_specs=(pl.BlockSpec((B, 3), lambda i: (0, 0)),
                   pl.BlockSpec((1, 1), lambda i: (0, 0))),
        compiler_params=pltpu.CompilerParams(dimension_semantics=("arbitrary",)),
    )(x_cls, w3b, b3, w4, b4, seq_logits, mask_f, labels)

    start_logits = seq_logits[0]   # (B, S)
    end_logits = seq_logits[1]     # (B, S)
    return loss, start_logits, end_logits, yn


def reference(seq_out, mask, slab, elab, w1, b1, w2, b2, w3, b3, w4, b4):
    h = jax.nn.relu(seq_out @ w1 + b1)
    lg = h @ w2 + b2
    start, end = lg[..., 0], lg[..., 1]
    pooled = seq_out[:, 0, :]
    h2 = jax.nn.relu(pooled @ w3 + b3)
    yn = h2 @ w4 + b4
    mask = mask.astype(jnp.float32)
    sl_ = start * mask + (1.0 - mask) * INF
    el_ = end * mask + (1.0 - mask) * INF
    all_s = jnp.concatenate([sl_, yn], axis=-1)
    all_e = jnp.concatenate([el_, yn], axis=-1)

    def ce(logits, labels):
        lse = jax.nn.logsumexp(logits, axis=-1)
        picked = jnp.take_along_axis(logits, labels[:, None], axis=-1)[:, 0]
        return jnp.mean(lse - picked)

    loss = (ce(all_s, slab) + ce(all_e, elab)) / 2.0
    return loss, start, end, yn


if __name__ == "__main__":
    B, S, H = 2, 8, 32
    key = jax.random.PRNGKey(0)
    keys = jax.random.split(key, 8)

    # "roberta" output stand-in + batch fields
    sequence_output = jax.random.normal(keys[0], (B, S, H), dtype=jnp.float32)
    input_mask = jnp.array([[1, 1, 1, 1, 1, 1, 0, 0],
                            [1, 1, 1, 1, 1, 0, 0, 0]], dtype=jnp.float32)
    start_position = jnp.array([2, 0], dtype=jnp.int32)
    end_position = jnp.array([4, 0], dtype=jnp.int32)
    unk_label = jnp.array([0, 1], dtype=jnp.int32)
    yes_label = jnp.array([0, 0], dtype=jnp.int32)
    no_label = jnp.array([0, 0], dtype=jnp.int32)
    extractive_label = jnp.array([1, 0], dtype=jnp.int32)

    # label glue (integer arithmetic, same as the PyTorch forward)
    max_seq_len = S
    non_ext = max_seq_len + no_label + 2 * unk_label
    all_start_label = (extractive_label * start_position
                       + (1 - extractive_label) * non_ext).astype(jnp.int32)
    all_end_label = (extractive_label * end_position
                     + (1 - extractive_label) * non_ext).astype(jnp.int32)

    # deterministic parameter init (normal std=0.02, zero bias), stored (in, out)
    std = 0.02
    w1 = (jax.random.normal(keys[1], (H, H)) * std).astype(jnp.float32)
    b1 = jnp.zeros((1, H), jnp.float32)
    w2 = (jax.random.normal(keys[2], (H, 2)) * std).astype(jnp.float32)
    b2 = jnp.zeros((1, 2), jnp.float32)
    w3 = (jax.random.normal(keys[3], (H, H)) * std).astype(jnp.float32)
    b3 = jnp.zeros((1, H), jnp.float32)
    w4 = (jax.random.normal(keys[4], (H, 3)) * std).astype(jnp.float32)
    b4 = jnp.zeros((1, 3), jnp.float32)

    loss_o, start_logits, end_logits, yn = roberta_coqa_pallas(
        sequence_output, input_mask, all_start_label, all_end_label,
        w1, b1, w2, b2, w3, b3, w4, b4)
    jax.block_until_ready((loss_o, start_logits, end_logits, yn))

    # assemble forward outputs (glue, same as the PyTorch module)
    loss = loss_o[0, 0]
    output = {
        "start_logits": start_logits,
        "end_logits": end_logits,
        "yes_logits": yn[:, 0:1],
        "no_logits": yn[:, 1:2],
        "unk_logits": yn[:, 2:3],
    }

    # sanity check against a pure-JAX f32 reference
    ref_loss, ref_start, ref_end, ref_yn = reference(
        sequence_output, input_mask, all_start_label, all_end_label,
        w1, b1, w2, b2, w3, b3, w4, b4)
    assert jnp.allclose(loss, ref_loss, atol=1e-2, rtol=1e-2)
    assert jnp.allclose(start_logits, ref_start, atol=1e-2, rtol=1e-2)
    assert jnp.allclose(end_logits, ref_end, atol=1e-2, rtol=1e-2)
    assert jnp.allclose(yn, ref_yn, atol=1e-2, rtol=1e-2)

    print("KERNEL_OK")
</pallas_src>

<mosaic_0001>
module attributes {stable_mosaic.version = 11 : i64} {
  func.func @_head_kernel(%arg0: i32, %arg1: memref<16x32xf32, #tpu.memory_space<vmem>>, %arg2: memref<32x32xbf16, #tpu.memory_space<vmem>>, %arg3: memref<1x32xf32, #tpu.memory_space<vmem>>, %arg4: memref<32x2xbf16, #tpu.memory_space<vmem>>, %arg5: memref<1x2xf32, #tpu.memory_space<vmem>>, %arg6: memref<16x2xf32, #tpu.memory_space<vmem>>) attributes {dimension_semantics = [#tpu.dimension_semantics<parallel>], iteration_bounds = array<i64: 1>, scalar_prefetch = 0 : i64, scratch_operands = 0 : i64, tpu.core_type = #tpu.core_type<tc>, window_params = [{transform_indices = @transform_0, window_bounds = array<i64: 16, 32>}, {pipeline_mode = #tpu.pipeline_mode<synchronous>, transform_indices = @transform_1, window_bounds = array<i64: 32, 32>}, {pipeline_mode = #tpu.pipeline_mode<synchronous>, transform_indices = @transform_2, window_bounds = array<i64: 1, 32>}, {pipeline_mode = #tpu.pipeline_mode<synchronous>, transform_indices = @transform_3, window_bounds = array<i64: 32, 2>}, {pipeline_mode = #tpu.pipeline_mode<synchronous>, transform_indices = @transform_4, window_bounds = array<i64: 1, 2>}, {transform_indices = @transform_5, window_bounds = array<i64: 16, 2>}]} {
    %c0 = arith.constant 0 : index
    %c0_0 = arith.constant 0 : index
    %0 = vector.load %arg1[%c0, %c0_0] : memref<16x32xf32, #tpu.memory_space<vmem>>, vector<16x32xf32>
    %1 = arith.truncf %0 : vector<16x32xf32> to vector<16x32xbf16>
    %c0_1 = arith.constant 0 : index
    %c0_2 = arith.constant 0 : index
    %2 = vector.load %arg2[%c0_1, %c0_2] : memref<32x32xbf16, #tpu.memory_space<vmem>>, vector<32x32xbf16>
    %cst = arith.constant dense<0.000000e+00> : vector<16x32xf32>
    %3 = tpu.matmul %1, %2, %cst {dimension_numbers = #tpu.dot_dimension_numbers<[1], [0], [0], [1], [0, 0, 1, 1], [], []>} : vector<16x32xbf16>, vector<32x32xbf16>, vector<16x32xf32> -> vector<16x32xf32>
    %c0_3 = arith.constant 0 : index
    %c0_4 = arith.constant 0 : index
    %4 = vector.load %arg3[%c0_3, %c0_4] : memref<1x32xf32, #tpu.memory_space<vmem>>, vector<1x32xf32>
    %5 = vector.broadcast %4 : vector<1x32xf32> to vector<16x32xf32>
    %6 = arith.addf %3, %5 : vector<16x32xf32>
    %cst_5 = arith.constant 0.000000e+00 : f32
    %7 = vector.broadcast %cst_5 : f32 to vector<16x32xf32>
    %8 = arith.maximumf %6, %7 : vector<16x32xf32>
    %9 = arith.truncf %8 : vector<16x32xf32> to vector<16x32xbf16>
    %c0_6 = arith.constant 0 : index
    %c0_7 = arith.constant 0 : index
    %10 = vector.load %arg4[%c0_6, %c0_7] : memref<32x2xbf16, #tpu.memory_space<vmem>>, vector<32x2xbf16>
    %cst_8 = arith.constant dense<0.000000e+00> : vector<16x2xf32>
    %11 = tpu.matmul %9, %10, %cst_8 {dimension_numbers = #tpu.dot_dimension_numbers<[1], [0], [0], [1], [0, 0, 1, 1], [], []>} : vector<16x32xbf16>, vector<32x2xbf16>, vector<16x2xf32> -> vector<16x2xf32>
    %c0_9 = arith.constant 0 : index
    %c0_10 = arith.constant 0 : index
    %12 = vector.load %arg5[%c0_9, %c0_10] : memref<1x2xf32, #tpu.memory_space<vmem>>, vector<1x2xf32>
    %13 = vector.broadcast %12 : vector<1x2xf32> to vector<16x2xf32>
    %14 = arith.addf %11, %13 : vector<16x2xf32>
    %c0_11 = arith.constant 0 : index
    %c0_12 = arith.constant 0 : index
    %15 = vector.load %arg6[%c0_11, %c0_12] : memref<16x2xf32, #tpu.memory_space<vmem>>, vector<16x2xf32>
    tpu.vector_store %arg6[%c0_11, %c0_12], %14 {strides = array<i32>} : memref<16x2xf32, #tpu.memory_space<vmem>>, vector<16x2xf32>,
    return
  }
  func.func @transform_0(%arg0: i32) -> (i32, i32) {
    %c0_i32 = arith.constant 0 : i32
    %c0_i32_0 = arith.constant 0 : i32
    return %arg0, %c0_i32 : i32, i32
  }
  func.func @transform_1(%arg0: i32) -> (i32, i32) {
    %c0_i32 = arith.constant 0 : i32
    %c0_i32_0 = arith.constant 0 : i32
    %c0_i32_1 = arith.constant 0 : i32
    return %c0_i32, %c0_i32_0 : i32, i32
  }
  func.func @transform_2(%arg0: i32) -> (i32, i32) {
    %c0_i32 = arith.constant 0 : i32
    %c0_i32_0 = arith.constant 0 : i32
    %c0_i32_1 = arith.constant 0 : i32
    return %c0_i32, %c0_i32_0 : i32, i32
  }
  func.func @transform_3(%arg0: i32) -> (i32, i32) {
    %c0_i32 = arith.constant 0 : i32
    %c0_i32_0 = arith.constant 0 : i32
    %c0_i32_1 = arith.constant 0 : i32
    return %c0_i32, %c0_i32_0 : i32, i32
  }
  func.func @transform_4(%arg0: i32) -> (i32, i32) {
    %c0_i32 = arith.constant 0 : i32
    %c0_i32_0 = arith.constant 0 : i32
    %c0_i32_1 = arith.constant 0 : i32
    return %c0_i32, %c0_i32_0 : i32, i32
  }
  func.func @transform_5(%arg0: i32) -> (i32, i32) {
    %c0_i32 = arith.constant 0 : i32
    %c0_i32_0 = arith.constant 0 : i32
    return %arg0, %c0_i32 : i32, i32
  }
}

</mosaic_0001>

<bundles_post_ra>
// kernel: tpu_custom_call.1
= control target key start
LH: loop header
LB: loop body
LE: loop exit
PB: predicated region body
PF: predicated region fallthrough
CT: control target
= control target key end

     0   :  { %10 = vsyncpa [#allocation3], 0  ;;  %s179_s21 = smov [#allocation2]   ;;  %s180_s23 = smov 64   ;;  %s239_s0 = inlined_call_operand.vmem [shape: f32[16,32], index: 0, kind: input, shape index: {}]   ;;  %s240_s1 = inlined_call_operand.hbm [shape: bf16[32,32], index: 1, kind: input, shape index: {}]   ;;  %s241_s2 = inlined_call_operand.vmem [shape: f32[1,32], index: 2, kind: input, shape index: {}]   ;;  %s242_s3 = inlined_call_operand.vmem [shape: bf16[32,2], index: 3, kind: input, shape index: {}]   ;;  %s243_s4 = inlined_call_operand.vmem [shape: f32[1,2], index: 4, kind: input, shape index: {}]   ;;  %s244_s5 = inlined_call_operand.vmem [shape: f32[16,2], index: 5, kind: output, shape index: {}]  }
   0x1   :  { %s17_s20 = sshll.u32 %s240_s1, 4  ;;  %s19_s22 = sshll.u32 %s179_s21, 4  ;;  %s18_s20 = int_to_ptr.hbm [resolvable:$true] %s17_s20  ;;  %s20_s22 = int_to_ptr.vmem [resolvable:$true] %s19_s22 }
   0x2   :  { %s181_s24 = smov 4  }
   0x3   :  { %25 = dma.hbm_to_vmem [thread:$0]  %s18_s20, 256, %s20_s22, [#allocation3], %s180_s23, %s180_s23, %s181_s24  }
   0x4   :  { %177 = dma.done.wait [#allocation3], 256  }
   0x5   :  { %178 = vsyncadd [#allocation3], 4294967040  ;;  %v145_v0 = vld [vmem:[#allocation2 + $0x8] sm:$0xff]  ;;  %v144_v1 = vld [vmem:[#allocation2] sm:$0xff]  ;;  %vm60_vm0 = vcmask 261120   ;;  %vm118_vm1 = vcmask 15360  }
   0x6   :  { %70 = vmatpush.bf16.msra.mxu0 %v145_v0  ;;  %v37_v2 = vld [vmem:[%s239_s0] sm:$0xff]  ;;  %v38_v3 = vld [vmem:[%s239_s0 + $0x8] sm:$0xff] }
   0x7   :  { %v39_v4 = vpack.c.bf16 %v38_v3, %v37_v2  ;;  %v147_v5 = vld [vmem:[%s242_s3 + $0x8] sm:$0xff]  ;;  %v146_v6 = vld [vmem:[%s242_s3] sm:$0xff] }
   0x8   :  { %110 = vmatpush.bf16.msra.mxu1 %v147_v5  ;;  %v151_v8 = vld [vmem:[%s241_s2] ss:$0 sm:$0xff] }
   0x9   :  { %v152_v15 = vld [vmem:[%s243_s4] ss:$0 sm:$0xff] }
   0xa   :  { %71 = vmatpush.bf16.msra.mxu0 %v144_v1 }
   0xc   :  { %111 = vmatpush.bf16.msra.mxu1 %v146_v6 }
   0xd   :  { %134 = vmatmul.msk.bf16.vlgmr.msra.gmra.mxu0 %vm60_vm0, %v39_v4 }
  0x8a   :  { %v73_v7 = vpop.f32.mrf.mxu0 }
  0x8b   :  { %v74_v9 = vadd.f32 %v151_v8, %v73_v7 }
  0x8d   :  { %v78_v12 = vmax.f32 %v74_v9, 0.0 }
  0x92   :  { %v75_v10 = vpop.f32.mrf.mxu0 }
  0x93   :  { %v76_v11 = vadd.f32 %v151_v8, %v75_v10 }
  0x95   :  { %v79_v13 = vmax.f32 %v76_v11, 0.0 }
  0x97   :  { %v80_v14 = vpack.c.bf16 %v79_v13, %v78_v12 }
  0x99   :  { %143 = vmatmul.msk.bf16.vlgmr.msra.gmra.mxu1 %vm60_vm0, %v80_v14 }
 0x116   :  { %v113_v16 = vpop.f32.mrf.mxu1 }
 0x117   :  { %v114_v17 = vadd.f32 %v152_v15, %v113_v16 }
 0x119   :  { %119 = vst.msk [vmem:[%s244_s5] sm:$0xff] %vm118_vm1, %v114_v17 }
 0x11e   :  { %v115_v18 = vpop.f32.mrf.mxu1 }
 0x11f   :  { %v116_v19 = vadd.f32 %v152_v15, %v115_v18 }
 0x121   :  { %120 = vst.msk [vmem:[%s244_s5 + $0x8] sm:$0xff] %vm118_vm1, %v116_v19 }
 0x122   :  { %125 = vsyncpa [#allocation3], 1 }

</bundles_post_ra>
